<compile_context>
chip_gen: v6e
topology: v6e:2x2x1
jax: 0.10.0
libtpu: 0.0.40
codegen_flags: <defaults>
</compile_context>

<pallas_src>
import functools

import jax
import jax.numpy as jnp
import numpy as np
from jax import lax
from jax.experimental import pallas as pl
from jax.experimental.pallas import tpu as pltpu

TAU = 2.0
LANES = 128
SUB = 8  # sublanes per register-resident sub-tile (one f32 vreg row-group)


def _mt_acc_kernel(x_ref, o_ref, *, times, thresholds, seq_len, tm):
    """One grid step = one feature tile.

    x_ref : VMEM (T, TM, 128) input block (all time steps of this feature tile)
    o_ref : VMEM (T, TM, 128) output block
    """
    inv_tau = np.float32(1.0 / TAU)
    n_sub = tm // SUB

    @pl.loop(0, n_sub)
    def _(s):
        row0 = pl.multiple_of(s * SUB, SUB)
        # membrane potentials for all `times` LIF blocks live in vregs across t
        init_v = tuple(jnp.zeros((SUB, LANES), jnp.float32) for _ in range(times))

        def t_body(t, vs):
            x = x_ref[t, pl.ds(row0, SUB), :].astype(jnp.float32)
            acc = jnp.zeros((SUB, LANES), jnp.float32)
            new_vs = []
            for j in range(times):  # static unroll over the LIF blocks
                v = vs[j]
                v = v + (x - v) * inv_tau                 # charge (decay_input=True)
                fired = v >= thresholds[j]                # heaviside(v - thr), >=0 -> 1
                acc = acc + fired.astype(jnp.float32)
                new_vs.append(jnp.where(fired, jnp.float32(0.0), v))  # hard reset
            o_ref[t, pl.ds(row0, SUB), :] = acc.astype(o_ref.dtype)
            return tuple(new_vs)

        lax.fori_loop(0, seq_len, t_body, init_v, unroll=(seq_len <= 16))


def multi_threshold_acc(x, thresholds):
    """x: [T, B, C, H, W].  thresholds: [times] (concrete values, baked as consts)."""
    orig_shape = x.shape
    T = int(orig_shape[0])
    n = int(np.prod(orig_shape[1:]))
    itemsize = jnp.dtype(x.dtype).itemsize

    thr = tuple(float(t) for t in np.asarray(thresholds, dtype=np.float32))
    times = len(thr)

    # rows of 128 lanes, rounded up to a multiple of 8 sublanes
    m_raw = -(-n // LANES)
    m8 = ((m_raw + 7) // 8) * 8

    # Feature-tile size (sublanes per grid step): as large as a conservative
    # VMEM budget allows for double-buffered (T, TM, 128) in + out blocks.
    budget = 24 << 20  # bytes for 2x(in+out) buffers -> safe on v5e/v6e/v7x
    tm_cap = budget // (4 * T * LANES * itemsize)
    tm_cap = max(SUB, (tm_cap // SUB) * SUB)
    tm = min(1024, int(tm_cap), m8)
    tm = max(SUB, (tm // SUB) * SUB)
    # v7x has 2 TensorCores: prefer at least 2 feature tiles when possible.
    if m8 // tm < 2 and m8 >= 2 * SUB:
        tm = ((((m8 + 1) // 2) + SUB - 1) // SUB) * SUB

    m_pad = ((m8 + tm - 1) // tm) * tm
    n_pad = m_pad * LANES

    xf = x.reshape(T, n)
    if n_pad != n:
        # TODO(synk): ragged last feature tile handled by zero-padding (padded
        # lanes can never spike since thresholds >= 0.5); costs one extra HBM
        # copy only in the non-aligned case.
        xf = jnp.pad(xf, ((0, 0), (0, n_pad - n)))
    x3 = xf.reshape(T, m_pad, LANES)

    kernel = functools.partial(
        _mt_acc_kernel, times=times, thresholds=thr, seq_len=T, tm=tm
    )

    block_bytes = T * tm * LANES * itemsize
    vmem_limit = int(min(max(4 * block_bytes + (4 << 20), 16 << 20), 48 << 20))

    out3 = pl.pallas_call(
        kernel,
        out_shape=jax.ShapeDtypeStruct((T, m_pad, LANES), x.dtype),
        grid_spec=pltpu.PrefetchScalarGridSpec(
            num_scalar_prefetch=0,
            grid=(m_pad // tm,),
            in_specs=[pl.BlockSpec((T, tm, LANES), lambda i: (0, i, 0))],
            out_specs=pl.BlockSpec((T, tm, LANES), lambda i: (0, i, 0)),
        ),
        compiler_params=pltpu.CompilerParams(
            dimension_semantics=("parallel",),
            vmem_limit_bytes=vmem_limit,
        ),
    )(x3)

    out = out3.reshape(T, n_pad)[:, :n].reshape(orig_shape)
    return out


def multi_threshold_acc_ref(x, thresholds):
    """Pure-JAX reference of the PyTorch forward."""
    T = x.shape[0]
    out = jnp.zeros_like(x)
    for j in range(thresholds.shape[0]):
        thr = thresholds[j]
        v = jnp.zeros_like(x[0])
        spikes = []
        for t in range(T):
            v = v + (x[t] - v) / TAU
            s = (v >= thr).astype(x.dtype)
            v = v * (1.0 - s)
            spikes.append(s)
        out = out + jnp.stack(spikes, axis=0)
    return out


if __name__ == "__main__":
    times = 2
    basic_threshold = 0.5
    rng = 1.0 / times
    # deterministic "parameters": dynamic_threshold init of each LIF block
    thresholds = jnp.array(
        [basic_threshold + j * rng for j in range(times)], dtype=jnp.float32
    )

    # small shapes: T=8, B=2, C=4, H=W=16  (time-major SNN input)
    key = jax.random.PRNGKey(0)
    x = jax.random.uniform(
        key, (8, 2, 4, 16, 16), dtype=jnp.float32, minval=0.0, maxval=2.0
    )

    out = multi_threshold_acc(x, thresholds)
    out = jax.block_until_ready(out)

    ref = multi_threshold_acc_ref(x, thresholds)
    np.testing.assert_allclose(np.asarray(out), np.asarray(ref), rtol=1e-6, atol=1e-6)

    print("KERNEL_OK")
</pallas_src>

<mosaic_0001>
module attributes {stable_mosaic.version = 11 : i64} {
  func.func @_mt_acc_kernel(%arg0: i32, %arg1: memref<8x8x128xf32, #tpu.memory_space<vmem>>, %arg2: memref<8x8x128xf32, #tpu.memory_space<vmem>>) attributes {dimension_semantics = [#tpu.dimension_semantics<parallel>], iteration_bounds = array<i64: 2>, scalar_prefetch = 0 : i64, scratch_operands = 0 : i64, tpu.core_type = #tpu.core_type<tc>, window_params = [{transform_indices = @transform_0, window_bounds = array<i64: 8, 8, 128>}, {transform_indices = @transform_1, window_bounds = array<i64: 8, 8, 128>}]} {
    %c0_i32 = arith.constant 0 : i32
    %c1_i32 = arith.constant 1 : i32
    %0 = arith.muli %c0_i32, %c1_i32 : i32
    %c0_i32_0 = arith.constant 0 : i32
    %1 = arith.addi %c0_i32_0, %0 : i32
    %c8_i32 = arith.constant 8 : i32
    %2 = arith.muli %1, %c8_i32 : i32
    %3 = tpu.assume_multiple %2, 8 : i32
    %cst = arith.constant 0.000000e+00 : f32
    %4 = vector.broadcast %cst : f32 to vector<8x128xf32>
    %cst_1 = arith.constant 0.000000e+00 : f32
    %5 = vector.broadcast %cst_1 : f32 to vector<8x128xf32>
    %c0_i32_2 = arith.constant 0 : i32
    %6 = arith.index_cast %c0_i32_2 : i32 to index
    %7 = arith.index_cast %3 : i32 to index
    %c0 = arith.constant 0 : index
    %8 = vector.load %arg1[%6, %7, %c0] : memref<8x8x128xf32, #tpu.memory_space<vmem>>, vector<1x8x128xf32>
    %9 = vector.shape_cast %8 : vector<1x8x128xf32> to vector<8x128xf32>
    %cst_3 = arith.constant 0.000000e+00 : f32
    %10 = vector.broadcast %cst_3 : f32 to vector<8x128xf32>
    %11 = arith.subf %9, %4 : vector<8x128xf32>
    %cst_4 = arith.constant 5.000000e-01 : f32
    %12 = vector.broadcast %cst_4 : f32 to vector<8x128xf32>
    %13 = arith.mulf %11, %12 : vector<8x128xf32>
    %14 = arith.addf %4, %13 : vector<8x128xf32>
    %cst_5 = arith.constant 5.000000e-01 : f32
    %15 = vector.broadcast %cst_5 : f32 to vector<8x128xf32>
    %16 = arith.cmpf oge, %14, %15 : vector<8x128xf32>
    %17 = arith.extui %16 : vector<8x128xi1> to vector<8x128xi32>
    %18 = arith.sitofp %17 : vector<8x128xi32> to vector<8x128xf32>
    %19 = arith.addf %10, %18 : vector<8x128xf32>
    %cst_6 = arith.constant 0.000000e+00 : f32
    %20 = vector.broadcast %cst_6 : f32 to vector<8x128xf32>
    %21 = arith.select %16, %20, %14 : vector<8x128xi1>, vector<8x128xf32>
    %22 = arith.subf %9, %5 : vector<8x128xf32>
    %cst_7 = arith.constant 5.000000e-01 : f32
    %23 = vector.broadcast %cst_7 : f32 to vector<8x128xf32>
    %24 = arith.mulf %22, %23 : vector<8x128xf32>
    %25 = arith.addf %5, %24 : vector<8x128xf32>
    %cst_8 = arith.constant 1.000000e+00 : f32
    %26 = vector.broadcast %cst_8 : f32 to vector<8x128xf32>
    %27 = arith.cmpf oge, %25, %26 : vector<8x128xf32>
    %28 = arith.extui %27 : vector<8x128xi1> to vector<8x128xi32>
    %29 = arith.sitofp %28 : vector<8x128xi32> to vector<8x128xf32>
    %30 = arith.addf %19, %29 : vector<8x128xf32>
    %cst_9 = arith.constant 0.000000e+00 : f32
    %31 = vector.broadcast %cst_9 : f32 to vector<8x128xf32>
    %32 = arith.select %27, %31, %25 : vector<8x128xi1>, vector<8x128xf32>
    %33 = arith.index_cast %c0_i32_2 : i32 to index
    %34 = arith.index_cast %3 : i32 to index
    %c0_10 = arith.constant 0 : index
    %35 = vector.load %arg2[%33, %34, %c0_10] : memref<8x8x128xf32, #tpu.memory_space<vmem>>, vector<1x8x128xf32>
    %36 = vector.shape_cast %35 : vector<1x8x128xf32> to vector<8x128xf32>
    %37 = vector.shape_cast %30 : vector<8x128xf32> to vector<1x8x128xf32>
    tpu.vector_store %arg2[%33, %34, %c0_10], %37 {strides = array<i32>} : memref<8x8x128xf32, #tpu.memory_space<vmem>>, vector<1x8x128xf32>,
    %c1_i32_11 = arith.constant 1 : i32
    %38 = arith.index_cast %c1_i32_11 : i32 to index
    %39 = arith.index_cast %3 : i32 to index
    %c0_12 = arith.constant 0 : index
    %40 = vector.load %arg1[%38, %39, %c0_12] : memref<8x8x128xf32, #tpu.memory_space<vmem>>, vector<1x8x128xf32>
    %41 = vector.shape_cast %40 : vector<1x8x128xf32> to vector<8x128xf32>
    %cst_13 = arith.constant 0.000000e+00 : f32
    %42 = vector.broadcast %cst_13 : f32 to vector<8x128xf32>
    %43 = arith.subf %41, %21 : vector<8x128xf32>
    %cst_14 = arith.constant 5.000000e-01 : f32
    %44 = vector.broadcast %cst_14 : f32 to vector<8x128xf32>
    %45 = arith.mulf %43, %44 : vector<8x128xf32>
    %46 = arith.addf %21, %45 : vector<8x128xf32>
    %cst_15 = arith.constant 5.000000e-01 : f32
    %47 = vector.broadcast %cst_15 : f32 to vector<8x128xf32>
    %48 = arith.cmpf oge, %46, %47 : vector<8x128xf32>
    %49 = arith.extui %48 : vector<8x128xi1> to vector<8x128xi32>
    %50 = arith.sitofp %49 : vector<8x128xi32> to vector<8x128xf32>
    %51 = arith.addf %42, %50 : vector<8x128xf32>
    %cst_16 = arith.constant 0.000000e+00 : f32
    %52 = vector.broadcast %cst_16 : f32 to vector<8x128xf32>
    %53 = arith.select %48, %52, %46 : vector<8x128xi1>, vector<8x128xf32>
    %54 = arith.subf %41, %32 : vector<8x128xf32>
    %cst_17 = arith.constant 5.000000e-01 : f32
    %55 = vector.broadcast %cst_17 : f32 to vector<8x128xf32>
    %56 = arith.mulf %54, %55 : vector<8x128xf32>
    %57 = arith.addf %32, %56 : vector<8x128xf32>
    %cst_18 = arith.constant 1.000000e+00 : f32
    %58 = vector.broadcast %cst_18 : f32 to vector<8x128xf32>
    %59 = arith.cmpf oge, %57, %58 : vector<8x128xf32>
    %60 = arith.extui %59 : vector<8x128xi1> to vector<8x128xi32>
    %61 = arith.sitofp %60 : vector<8x128xi32> to vector<8x128xf32>
    %62 = arith.addf %51, %61 : vector<8x128xf32>
    %cst_19 = arith.constant 0.000000e+00 : f32
    %63 = vector.broadcast %cst_19 : f32 to vector<8x128xf32>
    %64 = arith.select %59, %63, %57 : vector<8x128xi1>, vector<8x128xf32>
    %65 = arith.index_cast %c1_i32_11 : i32 to index
    %66 = arith.index_cast %3 : i32 to index
    %c0_20 = arith.constant 0 : index
    %67 = vector.load %arg2[%65, %66, %c0_20] : memref<8x8x128xf32, #tpu.memory_space<vmem>>, vector<1x8x128xf32>
    %68 = vector.shape_cast %67 : vector<1x8x128xf32> to vector<8x128xf32>
    %69 = vector.shape_cast %62 : vector<8x128xf32> to vector<1x8x128xf32>
    tpu.vector_store %arg2[%65, %66, %c0_20], %69 {strides = array<i32>} : memref<8x8x128xf32, #tpu.memory_space<vmem>>, vector<1x8x128xf32>,
    %c2_i32 = arith.constant 2 : i32
    %70 = arith.index_cast %c2_i32 : i32 to index
    %71 = arith.index_cast %3 : i32 to index
    %c0_21 = arith.constant 0 : index
    %72 = vector.load %arg1[%70, %71, %c0_21] : memref<8x8x128xf32, #tpu.memory_space<vmem>>, vector<1x8x128xf32>
    %73 = vector.shape_cast %72 : vector<1x8x128xf32> to vector<8x128xf32>
    %cst_22 = arith.constant 0.000000e+00 : f32
    %74 = vector.broadcast %cst_22 : f32 to vector<8x128xf32>
    %75 = arith.subf %73, %53 : vector<8x128xf32>
    %cst_23 = arith.constant 5.000000e-01 : f32
    %76 = vector.broadcast %cst_23 : f32 to vector<8x128xf32>
    %77 = arith.mulf %75, %76 : vector<8x128xf32>
    %78 = arith.addf %53, %77 : vector<8x128xf32>
    %cst_24 = arith.constant 5.000000e-01 : f32
    %79 = vector.broadcast %cst_24 : f32 to vector<8x128xf32>
    %80 = arith.cmpf oge, %78, %79 : vector<8x128xf32>
    %81 = arith.extui %80 : vector<8x128xi1> to vector<8x128xi32>
    %82 = arith.sitofp %81 : vector<8x128xi32> to vector<8x128xf32>
    %83 = arith.addf %74, %82 : vector<8x128xf32>
    %cst_25 = arith.constant 0.000000e+00 : f32
    %84 = vector.broadcast %cst_25 : f32 to vector<8x128xf32>
    %85 = arith.select %80, %84, %78 : vector<8x128xi1>, vector<8x128xf32>
    %86 = arith.subf %73, %64 : vector<8x128xf32>
    %cst_26 = arith.constant 5.000000e-01 : f32
    %87 = vector.broadcast %cst_26 : f32 to vector<8x128xf32>
    %88 = arith.mulf %86, %87 : vector<8x128xf32>
    %89 = arith.addf %64, %88 : vector<8x128xf32>
    %cst_27 = arith.constant 1.000000e+00 : f32
    %90 = vector.broadcast %cst_27 : f32 to vector<8x128xf32>
    %91 = arith.cmpf oge, %89, %90 : vector<8x128xf32>
    %92 = arith.extui %91 : vector<8x128xi1> to vector<8x128xi32>
    %93 = arith.sitofp %92 : vector<8x128xi32> to vector<8x128xf32>
    %94 = arith.addf %83, %93 : vector<8x128xf32>
    %cst_28 = arith.constant 0.000000e+00 : f32
    %95 = vector.broadcast %cst_28 : f32 to vector<8x128xf32>
    %96 = arith.select %91, %95, %89 : vector<8x128xi1>, vector<8x128xf32>
    %97 = arith.index_cast %c2_i32 : i32 to index
    %98 = arith.index_cast %3 : i32 to index
    %c0_29 = arith.constant 0 : index
    %99 = vector.load %arg2[%97, %98, %c0_29] : memref<8x8x128xf32, #tpu.memory_space<vmem>>, vector<1x8x128xf32>
    %100 = vector.shape_cast %99 : vector<1x8x128xf32> to vector<8x128xf32>
    %101 = vector.shape_cast %94 : vector<8x128xf32> to vector<1x8x128xf32>
    tpu.vector_store %arg2[%97, %98, %c0_29], %101 {strides = array<i32>} : memref<8x8x128xf32, #tpu.memory_space<vmem>>, vector<1x8x128xf32>,
    %c3_i32 = arith.constant 3 : i32
    %102 = arith.index_cast %c3_i32 : i32 to index
    %103 = arith.index_cast %3 : i32 to index
    %c0_30 = arith.constant 0 : index
    %104 = vector.load %arg1[%102, %103, %c0_30] : memref<8x8x128xf32, #tpu.memory_space<vmem>>, vector<1x8x128xf32>
    %105 = vector.shape_cast %104 : vector<1x8x128xf32> to vector<8x128xf32>
    %cst_31 = arith.constant 0.000000e+00 : f32
    %106 = vector.broadcast %cst_31 : f32 to vector<8x128xf32>
    %107 = arith.subf %105, %85 : vector<8x128xf32>
    %cst_32 = arith.constant 5.000000e-01 : f32
    %108 = vector.broadcast %cst_32 : f32 to vector<8x128xf32>
    %109 = arith.mulf %107, %108 : vector<8x128xf32>
    %110 = arith.addf %85, %109 : vector<8x128xf32>
    %cst_33 = arith.constant 5.000000e-01 : f32
    %111 = vector.broadcast %cst_33 : f32 to vector<8x128xf32>
    %112 = arith.cmpf oge, %110, %111 : vector<8x128xf32>
    %113 = arith.extui %112 : vector<8x128xi1> to vector<8x128xi32>
    %114 = arith.sitofp %113 : vector<8x128xi32> to vector<8x128xf32>
    %115 = arith.addf %106, %114 : vector<8x128xf32>
    %cst_34 = arith.constant 0.000000e+00 : f32
    %116 = vector.broadcast %cst_34 : f32 to vector<8x128xf32>
    %117 = arith.select %112, %116, %110 : vector<8x128xi1>, vector<8x128xf32>
    %118 = arith.subf %105, %96 : vector<8x128xf32>
    %cst_35 = arith.constant 5.000000e-01 : f32
    %119 = vector.broadcast %cst_35 : f32 to vector<8x128xf32>
    %120 = arith.mulf %118, %119 : vector<8x128xf32>
    %121 = arith.addf %96, %120 : vector<8x128xf32>
    %cst_36 = arith.constant 1.000000e+00 : f32
    %122 = vector.broadcast %cst_36 : f32 to vector<8x128xf32>
    %123 = arith.cmpf oge, %121, %122 : vector<8x128xf32>
    %124 = arith.extui %123 : vector<8x128xi1> to vector<8x128xi32>
    %125 = arith.sitofp %124 : vector<8x128xi32> to vector<8x128xf32>
    %126 = arith.addf %115, %125 : vector<8x128xf32>
    %cst_37 = arith.constant 0.000000e+00 : f32
    %127 = vector.broadcast %cst_37 : f32 to vector<8x128xf32>
    %128 = arith.select %123, %127, %121 : vector<8x128xi1>, vector<8x128xf32>
    %129 = arith.index_cast %c3_i32 : i32 to index
    %130 = arith.index_cast %3 : i32 to index
    %c0_38 = arith.constant 0 : index
    %131 = vector.load %arg2[%129, %130, %c0_38] : memref<8x8x128xf32, #tpu.memory_space<vmem>>, vector<1x8x128xf32>
    %132 = vector.shape_cast %131 : vector<1x8x128xf32> to vector<8x128xf32>
    %133 = vector.shape_cast %126 : vector<8x128xf32> to vector<1x8x128xf32>
    tpu.vector_store %arg2[%129, %130, %c0_38], %133 {strides = array<i32>} : memref<8x8x128xf32, #tpu.memory_space<vmem>>, vector<1x8x128xf32>,
    %c4_i32 = arith.constant 4 : i32
    %134 = arith.index_cast %c4_i32 : i32 to index
    %135 = arith.index_cast %3 : i32 to index
    %c0_39 = arith.constant 0 : index
    %136 = vector.load %arg1[%134, %135, %c0_39] : memref<8x8x128xf32, #tpu.memory_space<vmem>>, vector<1x8x128xf32>
    %137 = vector.shape_cast %136 : vector<1x8x128xf32> to vector<8x128xf32>
    %cst_40 = arith.constant 0.000000e+00 : f32
    %138 = vector.broadcast %cst_40 : f32 to vector<8x128xf32>
    %139 = arith.subf %137, %117 : vector<8x128xf32>
    %cst_41 = arith.constant 5.000000e-01 : f32
    %140 = vector.broadcast %cst_41 : f32 to vector<8x128xf32>
    %141 = arith.mulf %139, %140 : vector<8x128xf32>
    %142 = arith.addf %117, %141 : vector<8x128xf32>
    %cst_42 = arith.constant 5.000000e-01 : f32
    %143 = vector.broadcast %cst_42 : f32 to vector<8x128xf32>
    %144 = arith.cmpf oge, %142, %143 : vector<8x128xf32>
    %145 = arith.extui %144 : vector<8x128xi1> to vector<8x128xi32>
    %146 = arith.sitofp %145 : vector<8x128xi32> to vector<8x128xf32>
    %147 = arith.addf %138, %146 : vector<8x128xf32>
    %cst_43 = arith.constant 0.000000e+00 : f32
    %148 = vector.broadcast %cst_43 : f32 to vector<8x128xf32>
    %149 = arith.select %144, %148, %142 : vector<8x128xi1>, vector<8x128xf32>
    %150 = arith.subf %137, %128 : vector<8x128xf32>
    %cst_44 = arith.constant 5.000000e-01 : f32
    %151 = vector.broadcast %cst_44 : f32 to vector<8x128xf32>
    %152 = arith.mulf %150, %151 : vector<8x128xf32>
    %153 = arith.addf %128, %152 : vector<8x128xf32>
    %cst_45 = arith.constant 1.000000e+00 : f32
    %154 = vector.broadcast %cst_45 : f32 to vector<8x128xf32>
    %155 = arith.cmpf oge, %153, %154 : vector<8x128xf32>
    %156 = arith.extui %155 : vector<8x128xi1> to vector<8x128xi32>
    %157 = arith.sitofp %156 : vector<8x128xi32> to vector<8x128xf32>
    %158 = arith.addf %147, %157 : vector<8x128xf32>
    %cst_46 = arith.constant 0.000000e+00 : f32
    %159 = vector.broadcast %cst_46 : f32 to vector<8x128xf32>
    %160 = arith.select %155, %159, %153 : vector<8x128xi1>, vector<8x128xf32>
    %161 = arith.index_cast %c4_i32 : i32 to index
    %162 = arith.index_cast %3 : i32 to index
    %c0_47 = arith.constant 0 : index
    %163 = vector.load %arg2[%161, %162, %c0_47] : memref<8x8x128xf32, #tpu.memory_space<vmem>>, vector<1x8x128xf32>
    %164 = vector.shape_cast %163 : vector<1x8x128xf32> to vector<8x128xf32>
    %165 = vector.shape_cast %158 : vector<8x128xf32> to vector<1x8x128xf32>
    tpu.vector_store %arg2[%161, %162, %c0_47], %165 {strides = array<i32>} : memref<8x8x128xf32, #tpu.memory_space<vmem>>, vector<1x8x128xf32>,
    %c5_i32 = arith.constant 5 : i32
    %166 = arith.index_cast %c5_i32 : i32 to index
    %167 = arith.index_cast %3 : i32 to index
    %c0_48 = arith.constant 0 : index
    %168 = vector.load %arg1[%166, %167, %c0_48] : memref<8x8x128xf32, #tpu.memory_space<vmem>>, vector<1x8x128xf32>
    %169 = vector.shape_cast %168 : vector<1x8x128xf32> to vector<8x128xf32>
    %cst_49 = arith.constant 0.000000e+00 : f32
    %170 = vector.broadcast %cst_49 : f32 to vector<8x128xf32>
    %171 = arith.subf %169, %149 : vector<8x128xf32>
    %cst_50 = arith.constant 5.000000e-01 : f32
    %172 = vector.broadcast %cst_50 : f32 to vector<8x128xf32>
    %173 = arith.mulf %171, %172 : vector<8x128xf32>
    %174 = arith.addf %149, %173 : vector<8x128xf32>
    %cst_51 = arith.constant 5.000000e-01 : f32
    %175 = vector.broadcast %cst_51 : f32 to vector<8x128xf32>
    %176 = arith.cmpf oge, %174, %175 : vector<8x128xf32>
    %177 = arith.extui %176 : vector<8x128xi1> to vector<8x128xi32>
    %178 = arith.sitofp %177 : vector<8x128xi32> to vector<8x128xf32>
    %179 = arith.addf %170, %178 : vector<8x128xf32>
    %cst_52 = arith.constant 0.000000e+00 : f32
    %180 = vector.broadcast %cst_52 : f32 to vector<8x128xf32>
    %181 = arith.select %176, %180, %174 : vector<8x128xi1>, vector<8x128xf32>
    %182 = arith.subf %169, %160 : vector<8x128xf32>
    %cst_53 = arith.constant 5.000000e-01 : f32
    %183 = vector.broadcast %cst_53 : f32 to vector<8x128xf32>
    %184 = arith.mulf %182, %183 : vector<8x128xf32>
    %185 = arith.addf %160, %184 : vector<8x128xf32>
    %cst_54 = arith.constant 1.000000e+00 : f32
    %186 = vector.broadcast %cst_54 : f32 to vector<8x128xf32>
    %187 = arith.cmpf oge, %185, %186 : vector<8x128xf32>
    %188 = arith.extui %187 : vector<8x128xi1> to vector<8x128xi32>
    %189 = arith.sitofp %188 : vector<8x128xi32> to vector<8x128xf32>
    %190 = arith.addf %179, %189 : vector<8x128xf32>
    %cst_55 = arith.constant 0.000000e+00 : f32
    %191 = vector.broadcast %cst_55 : f32 to vector<8x128xf32>
    %192 = arith.select %187, %191, %185 : vector<8x128xi1>, vector<8x128xf32>
    %193 = arith.index_cast %c5_i32 : i32 to index
    %194 = arith.index_cast %3 : i32 to index
    %c0_56 = arith.constant 0 : index
    %195 = vector.load %arg2[%193, %194, %c0_56] : memref<8x8x128xf32, #tpu.memory_space<vmem>>, vector<1x8x128xf32>
    %196 = vector.shape_cast %195 : vector<1x8x128xf32> to vector<8x128xf32>
    %197 = vector.shape_cast %190 : vector<8x128xf32> to vector<1x8x128xf32>
    tpu.vector_store %arg2[%193, %194, %c0_56], %197 {strides = array<i32>} : memref<8x8x128xf32, #tpu.memory_space<vmem>>, vector<1x8x128xf32>,
    %c6_i32 = arith.constant 6 : i32
    %198 = arith.index_cast %c6_i32 : i32 to index
    %199 = arith.index_cast %3 : i32 to index
    %c0_57 = arith.constant 0 : index
    %200 = vector.load %arg1[%198, %199, %c0_57] : memref<8x8x128xf32, #tpu.memory_space<vmem>>, vector<1x8x128xf32>
    %201 = vector.shape_cast %200 : vector<1x8x128xf32> to vector<8x128xf32>
    %cst_58 = arith.constant 0.000000e+00 : f32
    %202 = vector.broadcast %cst_58 : f32 to vector<8x128xf32>
    %203 = arith.subf %201, %181 : vector<8x128xf32>
    %cst_59 = arith.constant 5.000000e-01 : f32
    %204 = vector.broadcast %cst_59 : f32 to vector<8x128xf32>
    %205 = arith.mulf %203, %204 : vector<8x128xf32>
    %206 = arith.addf %181, %205 : vector<8x128xf32>
    %cst_60 = arith.constant 5.000000e-01 : f32
    %207 = vector.broadcast %cst_60 : f32 to vector<8x128xf32>
    %208 = arith.cmpf oge, %206, %207 : vector<8x128xf32>
    %209 = arith.extui %208 : vector<8x128xi1> to vector<8x128xi32>
    %210 = arith.sitofp %209 : vector<8x128xi32> to vector<8x128xf32>
    %211 = arith.addf %202, %210 : vector<8x128xf32>
    %cst_61 = arith.constant 0.000000e+00 : f32
    %212 = vector.broadcast %cst_61 : f32 to vector<8x128xf32>
    %213 = arith.select %208, %212, %206 : vector<8x128xi1>, vector<8x128xf32>
    %214 = arith.subf %201, %192 : vector<8x128xf32>
    %cst_62 = arith.constant 5.000000e-01 : f32
    %215 = vector.broadcast %cst_62 : f32 to vector<8x128xf32>
    %216 = arith.mulf %214, %215 : vector<8x128xf32>
    %217 = arith.addf %192, %216 : vector<8x128xf32>
    %cst_63 = arith.constant 1.000000e+00 : f32
    %218 = vector.broadcast %cst_63 : f32 to vector<8x128xf32>
    %219 = arith.cmpf oge, %217, %218 : vector<8x128xf32>
    %220 = arith.extui %219 : vector<8x128xi1> to vector<8x128xi32>
    %221 = arith.sitofp %220 : vector<8x128xi32> to vector<8x128xf32>
    %222 = arith.addf %211, %221 : vector<8x128xf32>
    %cst_64 = arith.constant 0.000000e+00 : f32
    %223 = vector.broadcast %cst_64 : f32 to vector<8x128xf32>
    %224 = arith.select %219, %223, %217 : vector<8x128xi1>, vector<8x128xf32>
    %225 = arith.index_cast %c6_i32 : i32 to index
    %226 = arith.index_cast %3 : i32 to index
    %c0_65 = arith.constant 0 : index
    %227 = vector.load %arg2[%225, %226, %c0_65] : memref<8x8x128xf32, #tpu.memory_space<vmem>>, vector<1x8x128xf32>
    %228 = vector.shape_cast %227 : vector<1x8x128xf32> to vector<8x128xf32>
    %229 = vector.shape_cast %222 : vector<8x128xf32> to vector<1x8x128xf32>
    tpu.vector_store %arg2[%225, %226, %c0_65], %229 {strides = array<i32>} : memref<8x8x128xf32, #tpu.memory_space<vmem>>, vector<1x8x128xf32>,
    %c7_i32 = arith.constant 7 : i32
    %230 = arith.index_cast %c7_i32 : i32 to index
    %231 = arith.index_cast %3 : i32 to index
    %c0_66 = arith.constant 0 : index
    %232 = vector.load %arg1[%230, %231, %c0_66] : memref<8x8x128xf32, #tpu.memory_space<vmem>>, vector<1x8x128xf32>
    %233 = vector.shape_cast %232 : vector<1x8x128xf32> to vector<8x128xf32>
    %cst_67 = arith.constant 0.000000e+00 : f32
    %234 = vector.broadcast %cst_67 : f32 to vector<8x128xf32>
    %235 = arith.subf %233, %213 : vector<8x128xf32>
    %cst_68 = arith.constant 5.000000e-01 : f32
    %236 = vector.broadcast %cst_68 : f32 to vector<8x128xf32>
    %237 = arith.mulf %235, %236 : vector<8x128xf32>
    %238 = arith.addf %213, %237 : vector<8x128xf32>
    %cst_69 = arith.constant 5.000000e-01 : f32
    %239 = vector.broadcast %cst_69 : f32 to vector<8x128xf32>
    %240 = arith.cmpf oge, %238, %239 : vector<8x128xf32>
    %241 = arith.extui %240 : vector<8x128xi1> to vector<8x128xi32>
    %242 = arith.sitofp %241 : vector<8x128xi32> to vector<8x128xf32>
    %243 = arith.addf %234, %242 : vector<8x128xf32>
    %cst_70 = arith.constant 0.000000e+00 : f32
    %244 = vector.broadcast %cst_70 : f32 to vector<8x128xf32>
    %245 = arith.select %240, %244, %238 : vector<8x128xi1>, vector<8x128xf32>
    %246 = arith.subf %233, %224 : vector<8x128xf32>
    %cst_71 = arith.constant 5.000000e-01 : f32
    %247 = vector.broadcast %cst_71 : f32 to vector<8x128xf32>
    %248 = arith.mulf %246, %247 : vector<8x128xf32>
    %249 = arith.addf %224, %248 : vector<8x128xf32>
    %cst_72 = arith.constant 1.000000e+00 : f32
    %250 = vector.broadcast %cst_72 : f32 to vector<8x128xf32>
    %251 = arith.cmpf oge, %249, %250 : vector<8x128xf32>
    %252 = arith.extui %251 : vector<8x128xi1> to vector<8x128xi32>
    %253 = arith.sitofp %252 : vector<8x128xi32> to vector<8x128xf32>
    %254 = arith.addf %243, %253 : vector<8x128xf32>
    %cst_73 = arith.constant 0.000000e+00 : f32
    %255 = vector.broadcast %cst_73 : f32 to vector<8x128xf32>
    %256 = arith.select %251, %255, %249 : vector<8x128xi1>, vector<8x128xf32>
    %257 = arith.index_cast %c7_i32 : i32 to index
    %258 = arith.index_cast %3 : i32 to index
    %c0_74 = arith.constant 0 : index
    %259 = vector.load %arg2[%257, %258, %c0_74] : memref<8x8x128xf32, #tpu.memory_space<vmem>>, vector<1x8x128xf32>
    %260 = vector.shape_cast %259 : vector<1x8x128xf32> to vector<8x128xf32>
    %261 = vector.shape_cast %254 : vector<8x128xf32> to vector<1x8x128xf32>
    tpu.vector_store %arg2[%257, %258, %c0_74], %261 {strides = array<i32>} : memref<8x8x128xf32, #tpu.memory_space<vmem>>, vector<1x8x128xf32>,
    %c8_i32_75 = arith.constant 8 : i32
    %c1_i32_76 = arith.constant 1 : i32
    return
  }
  func.func @transform_0(%arg0: i32) -> (i32, i32, i32) {
    %c0_i32 = arith.constant 0 : i32
    %c0_i32_0 = arith.constant 0 : i32
    %c0_i32_1 = arith.constant 0 : i32
    return %c0_i32, %arg0, %c0_i32_0 : i32, i32, i32
  }
  func.func @transform_1(%arg0: i32) -> (i32, i32, i32) {
    %c0_i32 = arith.constant 0 : i32
    %c0_i32_0 = arith.constant 0 : i32
    %c0_i32_1 = arith.constant 0 : i32
    return %c0_i32, %arg0, %c0_i32_0 : i32, i32, i32
  }
}

</mosaic_0001>

<bundles_post_ra>
// kernel: tpu_custom_call.1
= control target key start
LH: loop header
LB: loop body
LE: loop exit
PB: predicated region body
PF: predicated region fallthrough
CT: control target
= control target key end

     0   :  { %6 = vsyncpa [#allocation3], 0  ;;  %s794_s0 = inlined_call_operand.hbm [shape: f32[8,16,128], index: 0, kind: input, shape index: {}]   ;;  %s795_s1 = inlined_call_operand.hbm [shape: f32[8,16,128], index: 1, kind: output, shape index: {}]  }
   0x1   :  { %8 = vsyncpa [#allocation3 + $0x1], 0 }
   0x2   :  { %9 = vsyncpa [#allocation4], 0 }
   0x3   :  { %11 = vsyncpa [#allocation4 + $0x1], 0  ;;  %s601_s6 = smov 0   ;;  %s603_s7 = smov 0  }
   0x4   :  { %s605_s8 = smov 0   ;;  %s607_s9 = smov 0  }
   0x5 LB: > { %s622_s10 = sadd.s32 4294967295, %s580_s9   ;;  %s393_s11 = sadd.s32 4294967294, %s580_s9   ;;  %s580_s9 = sphi %s607_s9, %s811_s9   ;;  %s576_s8 = sphi %s605_s8, %s810_s8   ;;  %s572_s7 = sphi %s603_s7, %s809_s7   ;;  %s568_s6 = sphi %s601_s6, %s808_s6  }
   0x6   : > { %s626_s12 = sadd.s32 1, %s580_s9   ;;  %s24_s13 = sadd.s32 1, %s576_s8 }
   0x7   : > { %s21_s14 = ssub.s32 %s580_s9, %s626_s12  ;;  %p31_p0 = scmp.ne.s32.totalorder %s576_s8, %s572_s7 }
   0x8   : > { %p22_p1 = scmp.eq.s32.totalorder %s21_s14, 0  ;;  %p32_p2 = scmp.eq.s32.totalorder %s580_s9, 0 }
   0x9   : > { %p37_p3 = scmp.ne.s32.totalorder %s572_s7, %s568_s6  ;;  %p38_p4 = scmp.eq.s32.totalorder %s622_s10, 0 }
   0xa   : > { %s638_s15 = scalar_select %p22_p1, %s576_s8, %s24_s13  }
   0xb   : > { %p640_p5 = por %p32_p2, %p31_p0  ;;  %p644_p6 = por %p38_p4, %p37_p3 }
   0xc   : > { %p61_p7 = scmp.eq.s32.totalorder %s622_s10, 1  ;;  %p67_p8 = scmp.eq.s32.totalorder %s393_s11, 1 }
   0xd   : > { %s799_s17 = scalar_select %p644_p6, 1, 0 }
   0xe   : > { %p447_p10 = scmp.lt.s32.totalorder %s580_s9, 2  ;;  %p651_p11 = por %p61_p7, %p31_p0 }
   0xf   : > { %p655_p12 = por %p67_p8, %p37_p3  ;;  %s87_s20 = sand.u32 1, %s576_s8  }
  0x10   : > { %s800_s18 = scalar_select %p651_p11, 1, 0 }
  0x11   : > { %s801_s19 = scalar_select %p655_p12, 1, 0 }
  0x12   : > { %s397_s21 = sshll.u32 %s580_s9, 7  ;;  %s396_s22 = sshll.u32 %s87_s20, 6 }
  0x13   : > { %s664_s25 = scalar_lea.hbm %s794_s0, %s397_s21  ;;  %s91_s26 = scalar_lea.vmem [#allocation2], %s396_s22 }
  0x14   : > { %s97_s27 = sshll.u32 %s91_s26, 4  ;;  %p668_p13 = pnand %p447_p10, %p640_p5  ;;  %s672_s27 = int_to_ptr.vmem [resolvable:$true] %s97_s27 }
  0x15   : > { %s675_s29 = scalar_lea.sflag [#allocation3], %s87_s20  ;;  %s488_s30 = scalar_lea.hbm %s664_s25, 1024 }
  0x16   : > { %p489_p1 = scmp.ne.s32.totalorder %s664_s25, %s488_s30  ;;  %p490_p2 = pneg %p668_p13 }
  0x17   : > { %s493_s4 = scalar_lea.hbm %s794_s0, 2048  ;;  %p494_p5 = scmp.lt.s32.totalorder %s664_s25, %s794_s0 }
  0x18   : > { %p491_p3 = pnand %p490_p2, %p489_p1  ;;  %p495_p7 = scmp.lt.s32.totalorder %s493_s4, %s488_s30 }
  0x1a   : > { %p492_p4 = pneg %p491_p3  ;;  %p496_p8 = por %p495_p7, %p494_p5 }
  0x1c   : > { %p497_p10 = pnand %p496_p8, %p492_p4 }
  0x1e   : > { %500 = shalt.err (!%p497_p10)
}
  0x1f   : > { %s501_s13 = scalar_lea.vmem %s672_s27, 1024  ;;  %s582_s14 = smov [#allocation2]  }
  0x20   : > { %p502_p9 = scmp.ne.s32.totalorder %s672_s27, %s501_s13  ;;  %s506_s16 = sshll.u32 %s582_s14, 4  ;;  %s507_s16 = int_to_ptr.vmem [resolvable:$false] %s506_s16 }
  0x21   : > { %s508_s20 = scalar_lea.vmem %s507_s16, 2048  ;;  %p509_p3 = scmp.lt.s32.totalorder %s672_s27, %s507_s16 }
  0x22   : > { %p504_p0 = pnand %p502_p9, %p490_p2  ;;  %p510_p12 = scmp.lt.s32.totalorder %s508_s20, %s501_s13 }
  0x24   : > { %p505_p1 = pneg %p504_p0  ;;  %p511_p11 = por %p510_p12, %p509_p3 }
  0x26   : > { %p512_p6 = pnand %p511_p11, %p505_p1 }
  0x28   : > { %515 = shalt.err (!%p512_p6)
}
  0x29   : > { %s583_s21 = smov 256   ;;  %s584_s22 = smov 128  }
  0x2a   : > { %s585_s23 = smov 8   ;;  %p105_p9 = scmp.lt.s32.totalorder %s580_s9, 3 }
  0x2b   : > { %442 = dma.hbm_to_vmem [thread:$0]  (!%p668_p13), %s664_s25, 1024, %s672_s27, %s675_s29, %s583_s21, %s584_s22, %s585_s23  }
  0x2c   : > { %p803_p0 = scmp.ge.s32.totalorder %s580_s9, 1 }
  0x2e   : > { %p106_p2 = pnand %p803_p0, %p105_p9 }
  0x2f   : > { %s700_s24 = sand.u32 (!%p106_p2), 1, %s572_s7   ;;  %p804_p6 = scmp.ne.s32.totalorder (!%p106_p2), %s799_s17, 0 }
  0x30   : > { %109 = sbr.rel (%p106_p2) target bundleno = 132 (0x84), region = 24  ;;  %s399_s26 = sshll.u32 (!%p106_p2), %s700_s24, 6 }
  0x31   : > { %s112_s30 = scalar_lea.sflag (!%p106_p2), [#allocation3], %s700_s24  ;;  %s704_s2 = scalar_lea.vmem (!%p106_p2), [#allocation2], %s399_s26 }
  0x35   : > { %559 = dma.done.wait (%p804_p6), %s112_s30, 1024  }
  0x36   : > { %561 = vsyncadd (%p804_p6), %s112_s30, 4294966272  ;;  %v134_v0 = vld [vmem:[%s704_s2] sm:$0xff]  ;;  %v403_v2 = vld [vmem:[%s704_s2 + $0x8] sm:$0xff]  ;;  %v586_v3 = vmov 0.0   ;;  %s714_s17 = scalar_lea.vmem [#allocation5], %s399_s26  ;;  %s432_s27 = sshll.u32 %s622_s10, 7 }
  0x37   : > { %v135_v1 = vmul.f32 0.5, %v134_v0  ;;  %v407_v15 = vld [vmem:[%s704_s2 + $0x10] sm:$0xff]  ;;  %v411_v27 = vld [vmem:[%s704_s2 + $0x18] sm:$0xff]  ;;  %v415_v39 = vld [vmem:[%s704_s2 + $0x20] sm:$0xff]  ;;  %s306_s25 = sshll.u32 %s714_s17, 4  ;;  %s750_s3 = scalar_lea.hbm %s795_s1, %s432_s27  ;;  %s743_s25 = int_to_ptr.vmem [resolvable:$true] %s306_s25 }
  0x38   : > { %v419_v51 = vld [vmem:[%s704_s2 + $0x28] sm:$0xff]  ;;  %v423_v63 = vld [vmem:[%s704_s2 + $0x30] sm:$0xff]  ;;  %s294_s4 = scalar_lea.sflag [#allocation4], %s700_s24  ;;  %s516_s10 = scalar_lea.vmem %s743_s25, 1024 }
  0x39   : > { %vm137_vm0 = vcmp.ge.f32.partialorder %v135_v1, 0.5  ;;  %vm142_vm1 = vcmp.ge.f32.partialorder %v135_v1, 1.0  ;;  %p517_p11 = scmp.ne.s32.totalorder %s743_s25, %s516_s10  ;;  %p805_p12 = scmp.ne.s32.totalorder %s800_s18, 0 }
  0x3a   : > { %v401_v4 = vsel %vm137_vm0, 1.0, %v586_v3  ;;  %v141_v5 = vsel %vm137_vm0, 0.0, %v135_v1  ;;  %v402_v6 = vsel %vm142_vm1, 1.0, %v586_v3  ;;  %v146_v7 = vsel %vm142_vm1, 0.0, %v135_v1  ;;  %s587_s5 = smov [#allocation5]  }
  0x3b   : > { %v145_v8 = vadd.f32 %v402_v6, %v401_v4  ;;  %v151_v9 = vsub.f32 %v403_v2, %v141_v5  ;;  %v159_v10 = vsub.f32 %v403_v2, %v146_v7  ;;  %p518_p13 = pnand %p517_p11, %p805_p12  ;;  %s520_s11 = sshll.u32 %s587_s5, 4  ;;  %s521_s11 = int_to_ptr.vmem [resolvable:$false] %s520_s11 }
  0x3c   : > { %s522_s13 = scalar_lea.vmem %s521_s11, 2048  ;;  %p523_p5 = scmp.lt.s32.totalorder %s743_s25, %s521_s11 }
  0x3d   : > { %147 = vst [vmem:[%s714_s17] sm:$0xff] %v145_v8  ;;  %v152_v11 = vmul.f32 0.5, %v151_v9  ;;  %v160_v12 = vmul.f32 0.5, %v159_v10  ;;  %p519_p4 = pneg %p518_p13  ;;  %p524_p7 = scmp.lt.s32.totalorder %s522_s13, %s516_s10 }
  0x3f   : > { %v153_v13 = vadd.f32 %v152_v11, %v141_v5  ;;  %v161_v14 = vadd.f32 %v160_v12, %v146_v7  ;;  %v427_v12 = vld [vmem:[%s704_s2 + $0x38] sm:$0xff]  ;;  %p525_p8 = por %p524_p7, %p523_p5 }
  0x41   : > { %vm154_vm2 = vcmp.ge.f32.partialorder %v153_v13, 0.5  ;;  %vm162_vm3 = vcmp.ge.f32.partialorder %v161_v14, 1.0  ;;  %p526_p10 = pnand %p525_p8, %p519_p4 }
  0x42   : > { %v404_v16 = vsel %vm154_vm2, 1.0, %v586_v3  ;;  %v158_v17 = vsel %vm154_vm2, 0.0, %v153_v13  ;;  %v405_v18 = vsel %vm162_vm3, 1.0, %v586_v3  ;;  %v166_v19 = vsel %vm162_vm3, 0.0, %v161_v14 }
  0x43   : > { %v165_v20 = vadd.f32 %v405_v18, %v404_v16  ;;  %v172_v21 = vsub.f32 %v407_v15, %v158_v17  ;;  %v180_v22 = vsub.f32 %v407_v15, %v166_v19 }
  0x45   : > { %406 = vst [vmem:[%s714_s17 + $0x8] sm:$0xff] %v165_v20  ;;  %v173_v23 = vmul.f32 0.5, %v172_v21  ;;  %v181_v24 = vmul.f32 0.5, %v180_v22 }
  0x47   : > { %v174_v25 = vadd.f32 %v173_v23, %v158_v17  ;;  %v182_v26 = vadd.f32 %v181_v24, %v166_v19 }
  0x49   : > { %vm175_vm4 = vcmp.ge.f32.partialorder %v174_v25, 0.5  ;;  %vm183_vm5 = vcmp.ge.f32.partialorder %v182_v26, 1.0 }
  0x4a   : > { %v408_v28 = vsel %vm175_vm4, 1.0, %v586_v3  ;;  %v179_v29 = vsel %vm175_vm4, 0.0, %v174_v25  ;;  %v409_v30 = vsel %vm183_vm5, 1.0, %v586_v3  ;;  %v187_v31 = vsel %vm183_vm5, 0.0, %v182_v26 }
  0x4b   : > { %v186_v32 = vadd.f32 %v409_v30, %v408_v28  ;;  %v193_v33 = vsub.f32 %v411_v27, %v179_v29  ;;  %v201_v34 = vsub.f32 %v411_v27, %v187_v31 }
  0x4d   : > { %410 = vst [vmem:[%s714_s17 + $0x10] sm:$0xff] %v186_v32  ;;  %v194_v35 = vmul.f32 0.5, %v193_v33  ;;  %v202_v36 = vmul.f32 0.5, %v201_v34 }
  0x4f   : > { %v195_v37 = vadd.f32 %v194_v35, %v179_v29  ;;  %v203_v38 = vadd.f32 %v202_v36, %v187_v31 }
  0x51   : > { %vm196_vm6 = vcmp.ge.f32.partialorder %v195_v37, 0.5  ;;  %vm204_vm7 = vcmp.ge.f32.partialorder %v203_v38, 1.0 }
  0x52   : > { %v412_v40 = vsel %vm196_vm6, 1.0, %v586_v3  ;;  %v200_v41 = vsel %vm196_vm6, 0.0, %v195_v37  ;;  %v413_v42 = vsel %vm204_vm7, 1.0, %v586_v3  ;;  %v208_v43 = vsel %vm204_vm7, 0.0, %v203_v38 }
  0x53   : > { %v207_v44 = vadd.f32 %v413_v42, %v412_v40  ;;  %v214_v45 = vsub.f32 %v415_v39, %v200_v41  ;;  %v222_v46 = vsub.f32 %v415_v39, %v208_v43 }
  0x55   : > { %414 = vst [vmem:[%s714_s17 + $0x18] sm:$0xff] %v207_v44  ;;  %v215_v47 = vmul.f32 0.5, %v214_v45  ;;  %v223_v48 = vmul.f32 0.5, %v222_v46 }
  0x57   : > { %v216_v49 = vadd.f32 %v215_v47, %v200_v41  ;;  %v224_v50 = vadd.f32 %v223_v48, %v208_v43 }
  0x59   : > { %vm217_vm8 = vcmp.ge.f32.partialorder %v216_v49, 0.5  ;;  %vm225_vm9 = vcmp.ge.f32.partialorder %v224_v50, 1.0 }
  0x5a   : > { %v416_v52 = vsel %vm217_vm8, 1.0, %v586_v3  ;;  %v221_v53 = vsel %vm217_vm8, 0.0, %v216_v49  ;;  %v417_v54 = vsel %vm225_vm9, 1.0, %v586_v3  ;;  %v229_v55 = vsel %vm225_vm9, 0.0, %v224_v50 }
  0x5b   : > { %v228_v56 = vadd.f32 %v417_v54, %v416_v52  ;;  %v235_v57 = vsub.f32 %v419_v51, %v221_v53  ;;  %v243_v58 = vsub.f32 %v419_v51, %v229_v55 }
  0x5d   : > { %418 = vst [vmem:[%s714_s17 + $0x20] sm:$0xff] %v228_v56  ;;  %v236_v59 = vmul.f32 0.5, %v235_v57  ;;  %v244_v60 = vmul.f32 0.5, %v243_v58 }
  0x5f   : > { %v237_v61 = vadd.f32 %v236_v59, %v221_v53  ;;  %v245_v62 = vadd.f32 %v244_v60, %v229_v55 }
  0x61   : > { %vm238_vm10 = vcmp.ge.f32.partialorder %v237_v61, 0.5  ;;  %vm246_vm11 = vcmp.ge.f32.partialorder %v245_v62, 1.0 }
  0x62   : > { %v420_v0 = vsel %vm238_vm10, 1.0, %v586_v3  ;;  %v242_v1 = vsel %vm238_vm10, 0.0, %v237_v61  ;;  %v421_v2 = vsel %vm246_vm11, 1.0, %v586_v3  ;;  %v250_v4 = vsel %vm246_vm11, 0.0, %v245_v62 }
  0x63   : > { %v249_v5 = vadd.f32 %v421_v2, %v420_v0  ;;  %v256_v6 = vsub.f32 %v423_v63, %v242_v1  ;;  %v264_v7 = vsub.f32 %v423_v63, %v250_v4 }
  0x65   : > { %422 = vst [vmem:[%s714_s17 + $0x28] sm:$0xff] %v249_v5  ;;  %v257_v8 = vmul.f32 0.5, %v256_v6  ;;  %v265_v9 = vmul.f32 0.5, %v264_v7 }
  0x67   : > { %v258_v10 = vadd.f32 %v257_v8, %v242_v1  ;;  %v266_v11 = vadd.f32 %v265_v9, %v250_v4 }
  0x69   : > { %vm259_vm12 = vcmp.ge.f32.partialorder %v258_v10, 0.5  ;;  %vm267_vm13 = vcmp.ge.f32.partialorder %v266_v11, 1.0 }
  0x6a   : > { %v424_v13 = vsel %vm259_vm12, 1.0, %v586_v3  ;;  %v263_v14 = vsel %vm259_vm12, 0.0, %v258_v10  ;;  %v425_v15 = vsel %vm267_vm13, 1.0, %v586_v3  ;;  %v271_v16 = vsel %vm267_vm13, 0.0, %v266_v11 }
  0x6b   : > { %v270_v17 = vadd.f32 %v425_v15, %v424_v13  ;;  %v277_v18 = vsub.f32 %v427_v12, %v263_v14  ;;  %v284_v19 = vsub.f32 %v427_v12, %v271_v16 }
  0x6d   : > { %426 = vst [vmem:[%s714_s17 + $0x30] sm:$0xff] %v270_v17  ;;  %v278_v20 = vmul.f32 0.5, %v277_v18  ;;  %v285_v21 = vmul.f32 0.5, %v284_v19 }
  0x6f   : > { %v279_v22 = vadd.f32 %v278_v20, %v263_v14  ;;  %v286_v23 = vadd.f32 %v285_v21, %v271_v16 }
  0x71   : > { %vm280_vm14 = vcmp.ge.f32.partialorder %v279_v22, 0.5  ;;  %vm287_vm15 = vcmp.ge.f32.partialorder %v286_v23, 1.0 }
  0x72   : > { %v428_v24 = vsel %vm280_vm14, 1.0, %v586_v3  ;;  %v429_v25 = vsel %vm287_vm15, 1.0, %v586_v3 }
  0x73   : > { %v290_v26 = vadd.f32 %v429_v25, %v428_v24 }
  0x75   : > { %430 = vst [vmem:[%s714_s17 + $0x38] sm:$0xff] %v290_v26 }
  0x76   : > { %529 = shalt.err (!%p526_p10)
}
  0x77   : > { %s530_s14 = scalar_lea.hbm %s750_s3, 1024  ;;  %s534_s21 = scalar_lea.hbm %s795_s1, 2048 }
  0x78   : > { %p531_p1 = scmp.ne.s32.totalorder %s750_s3, %s530_s14  ;;  %p535_p0 = scmp.lt.s32.totalorder %s750_s3, %s795_s1 }
  0x79   : > { %p536_p2 = scmp.lt.s32.totalorder %s534_s21, %s530_s14 }
  0x7a   : > { %p532_p3 = pnand %p531_p1, %p805_p12 }
  0x7b   : > { %p537_p6 = por %p536_p2, %p535_p0 }
  0x7c   : > { %p533_p9 = pneg %p532_p3 }
  0x7e   : > { %p538_p11 = pnand %p537_p6, %p533_p9 }
  0x80   : > { %541 = shalt.err (!%p538_p11)
}
  0x81   : > { %s588_s26 = smov 128   ;;  %s589_s30 = smov 256  }
  0x82   : > { %s590_s2 = smov 8  }
  0x83   : > { %437 = dma.vmem_to_hbm [thread:$0]  (%p805_p12), %s743_s25, 1024, %s750_s3, %s294_s4, %s588_s26, %s589_s30, %s590_s2  }
  0x84 PF: > { %s321_s17 = sand.u32 1, %s568_s6   ;;  %p806_p13 = scmp.ne.s32.totalorder %s801_s19, 0 }
  0x85   : > { %p807_p4 = scmp.ge.s32.totalorder %s580_s9, 2  ;;  %s322_s27 = scalar_lea.sflag [#allocation4], %s321_s17 }
  0x87   : > { %p444_p5 = pnand %p807_p4, %p806_p13 }
  0x89   : > { %p445_p7 = pneg %p444_p5 }
  0x8b   : > { %563 = dma.done.wait (%p445_p7), %s322_s27, 1024  }
  0x8c   : > { %565 = vsyncadd (%p445_p7), %s322_s27, 4294966272  ;;  %p14_p8 = scmp.ge.s32.totalorder %s626_s12, 4   ;;  %s808_s6 = smov %s572_s7 }
  0x8d   : > { %s809_s7 = smov %s576_s8  ;;  %s810_s8 = smov %s638_s15 }
  0x8e   : > { %s811_s9 = smov %s626_s12  ;;  %16 = sbr.rel (!%p14_p8) target bundleno = 5 (0x5), region = 83 }
  0x93   :  { %327 = vsyncpa [#allocation3], 1 }
  0x94   :  { %329 = vsyncpa [#allocation3 + $0x1], 1 }
  0x95   :  { %330 = vsyncpa [#allocation4], 1 }
  0x96   :  { %332 = vsyncpa [#allocation4 + $0x1], 1 }

</bundles_post_ra>
